<compile_context>
chip_gen: v5e
topology: v5e:2x2
jax: 0.10.0
libtpu: 0.0.40
codegen_flags: <defaults>
</compile_context>

<pallas_src>
import jax
import jax.numpy as jnp
from jax.experimental import pallas as pl
from jax.experimental.pallas import tpu as pltpu

LANE = 128
SUBLANE = 8


def _round_up(x, m):
    return (x + m - 1) // m * m


def vae_forward_kernel(
    x_ref,       # [TB, D_in] f32
    eps_ref,     # [TB, Z]    f32 uniform [0,1) noise (torch.rand_like)
    w1_ref,      # [D_in, H]  bf16
    b1_ref,      # [1, H]     f32
    wh_ref,      # [H, HP]    bf16  fused mu|logvar head, lane-padded to 128
    bh_ref,      # [1, HP]    f32
    wd1_ref,     # [Z, H]     bf16
    bd1_ref,     # [1, H]     f32
    wd2_ref,     # [H, D_in]  bf16
    bd2_ref,     # [1, D_in]  f32
    xhat_ref,    # out: [TB, D_in] f32
    heads_ref,   # out: [TB, HP]   f32  (mu | logvar | zero-pad)
):
    z_dim = eps_ref.shape[-1]

    # ----- encoder fc -----
    h = jnp.dot(x_ref[...].astype(jnp.bfloat16), w1_ref[...],
                preferred_element_type=jnp.float32) + b1_ref[...]
    h = jnp.maximum(h, 0.0)

    # ----- fused mu/logvar heads (single lane-dense matmul + store) -----
    heads = jnp.dot(h.astype(jnp.bfloat16), wh_ref[...],
                    preferred_element_type=jnp.float32) + bh_ref[...]
    heads_ref[...] = heads          # full 128-lane unmasked store

    mu = heads[:, :z_dim]
    logvar = heads[:, z_dim:2 * z_dim]

    # ----- reparameterization (latent_space) -----
    std = jnp.exp(0.5 * logvar)                 # EUP
    z = mu + eps_ref[...] * std

    # ----- decoder -----
    hd = jnp.dot(z.astype(jnp.bfloat16), wd1_ref[...],
                 preferred_element_type=jnp.float32) + bd1_ref[...]
    hd = jnp.maximum(hd, 0.0)
    logits = jnp.dot(hd.astype(jnp.bfloat16), wd2_ref[...],
                     preferred_element_type=jnp.float32) + bd2_ref[...]
    xhat_ref[...] = jax.nn.sigmoid(logits).astype(xhat_ref.dtype)


def vae_forward(x_nchw, params, eps, *, tile_b=128):
    """Fused VAE forward. x_nchw: [B, C, H, W] f32; eps: [B, Z] uniform."""
    B = x_nchw.shape[0]
    d_in = x_nchw.shape[1] * x_nchw.shape[2] * x_nchw.shape[3]
    x = x_nchw.reshape(B, d_in).astype(jnp.float32)

    (w1, b1, wmu, bmu, wlv, blv, wd1, bd1, wd2, bd2) = params
    hidden = w1.shape[1]
    z_dim = wmu.shape[1]
    heads_pad = _round_up(2 * z_dim, LANE)

    # bf16 matmul weights; fuse + lane-pad the mu/logvar head weights/biases.
    w1_b = w1.astype(jnp.bfloat16)
    wd1_b = wd1.astype(jnp.bfloat16)
    wd2_b = wd2.astype(jnp.bfloat16)
    w_heads = jnp.pad(
        jnp.concatenate([wmu, wlv], axis=1).astype(jnp.bfloat16),
        ((0, 0), (0, heads_pad - 2 * z_dim)))
    b_heads = jnp.pad(
        jnp.concatenate([bmu, blv], axis=1),
        ((0, 0), (0, heads_pad - 2 * z_dim)))

    # Batch tiling: pad B to a multiple of the batch tile, grid over tiles.
    tb = min(tile_b, _round_up(B, SUBLANE))
    pb = _round_up(B, tb)
    if pb != B:
        x = jnp.pad(x, ((0, pb - B), (0, 0)))
        eps = jnp.pad(eps, ((0, pb - B), (0, 0)))
    grid = (pb // tb,)

    def batch_spec(shape):
        return pl.BlockSpec(shape, lambda i: (i, 0))

    def resident(arr):
        # Same block every grid step -> weight stays VMEM-resident (no re-DMA).
        return pl.BlockSpec(arr.shape, lambda i: (0, 0))

    flops = 2 * pb * (d_in * hidden + hidden * heads_pad
                      + z_dim * hidden + hidden * d_in)
    transcendentals = pb * (z_dim + d_in)            # exp + sigmoid
    bytes_accessed = int(
        x.size * 4 + eps.size * 4
        + (w1_b.size + w_heads.size + wd1_b.size + wd2_b.size) * 2
        + (b1.size + b_heads.size + bd1.size + bd2.size) * 4
        + pb * d_in * 4 + pb * heads_pad * 4)

    # TODO(synk): for real image sizes (d_in in the tens of thousands) w1/wd2
    # no longer fit whole in VMEM — tile d_in with a reduction ("arbitrary")
    # grid axis + VMEM scratch accumulator instead of whole-array blocks.
    x_hat, heads = pl.pallas_call(
        vae_forward_kernel,
        out_shape=(
            jax.ShapeDtypeStruct((pb, d_in), jnp.float32),
            jax.ShapeDtypeStruct((pb, heads_pad), jnp.float32),
        ),
        grid=grid,
        in_specs=[
            batch_spec((tb, d_in)),      # x
            batch_spec((tb, z_dim)),     # eps
            resident(w1_b), resident(b1),
            resident(w_heads), resident(b_heads),
            resident(wd1_b), resident(bd1),
            resident(wd2_b), resident(bd2),
        ],
        out_specs=(
            batch_spec((tb, d_in)),
            batch_spec((tb, heads_pad)),
        ),
        compiler_params=pltpu.CompilerParams(
            dimension_semantics=("parallel",)),
        cost_estimate=pl.CostEstimate(
            flops=flops, transcendentals=transcendentals,
            bytes_accessed=bytes_accessed),
    )(x, eps, w1_b, b1, w_heads, b_heads, wd1_b, bd1, wd2_b, bd2)

    x_hat = x_hat[:B]
    mu = heads[:B, :z_dim]
    logvar = heads[:B, z_dim:2 * z_dim]
    return x_hat, mu, logvar


def init_params(key, d_in, hidden, latent):
    """Deterministic synthetic parameters (PyTorch-default-style uniform init)."""
    def linear(key, fan_in, fan_out):
        k_w, k_b = jax.random.split(key)
        bound = 1.0 / jnp.sqrt(fan_in)
        w = jax.random.uniform(k_w, (fan_in, fan_out), jnp.float32, -bound, bound)
        b = jax.random.uniform(k_b, (1, fan_out), jnp.float32, -bound, bound)
        return w, b

    keys = jax.random.split(key, 5)
    w1, b1 = linear(keys[0], d_in, hidden)      # encoder fc
    wmu, bmu = linear(keys[1], hidden, latent)  # mu head
    wlv, blv = linear(keys[2], hidden, latent)  # logvar head
    wd1, bd1 = linear(keys[3], latent, hidden)  # decoder fc1
    wd2, bd2 = linear(keys[4], hidden, d_in)    # decoder fc2
    return (w1, b1, wmu, bmu, wlv, blv, wd1, bd1, wd2, bd2)


def ref_forward(x_nchw, params, eps):
    """Pure-JAX reference with the SAME bf16 matmul precision as the kernel."""
    B = x_nchw.shape[0]
    d_in = x_nchw.shape[1] * x_nchw.shape[2] * x_nchw.shape[3]
    xf = x_nchw.reshape(B, d_in)
    (w1, b1, wmu, bmu, wlv, blv, wd1, bd1, wd2, bd2) = params

    def mm(a, w):
        return jnp.dot(a.astype(jnp.bfloat16), w.astype(jnp.bfloat16),
                       preferred_element_type=jnp.float32)

    h = jnp.maximum(mm(xf, w1) + b1, 0.0)
    mu = mm(h, wmu) + bmu
    lv = mm(h, wlv) + blv
    z = mu + eps * jnp.exp(0.5 * lv)
    hd = jnp.maximum(mm(z, wd1) + bd1, 0.0)
    xhat = jax.nn.sigmoid(mm(hd, wd2) + bd2)
    return xhat, mu, lv


if __name__ == "__main__":
    key = jax.random.PRNGKey(0)
    k_x, k_p, k_eps = jax.random.split(key, 3)

    # Small shapes consistent with an image VAE: batch=2, channels=4, 16x16.
    B, C, H, W = 2, 4, 16, 16
    d_in = C * H * W          # 1024
    hidden = 128
    latent = 32

    x = jax.random.normal(k_x, (B, C, H, W), jnp.float32)
    params = init_params(k_p, d_in, hidden, latent)
    # torch.rand_like -> uniform [0, 1)
    eps = jax.random.uniform(k_eps, (B, latent), jnp.float32)

    x_hat, mu, logvar = vae_forward(x, params, eps)
    jax.block_until_ready((x_hat, mu, logvar))

    xhat_ref, mu_ref, lv_ref = ref_forward(x, params, eps)

    assert x_hat.shape == (B, d_in)
    assert mu.shape == (B, latent) and logvar.shape == (B, latent)
    assert jnp.allclose(x_hat, xhat_ref, atol=2e-3, rtol=2e-3), "x_hat mismatch"
    assert jnp.allclose(mu, mu_ref, atol=2e-3, rtol=2e-3), "mu mismatch"
    assert jnp.allclose(logvar, lv_ref, atol=2e-3, rtol=2e-3), "logvar mismatch"

    print("KERNEL_OK")
</pallas_src>

<mosaic_0001>
module attributes {stable_mosaic.version = 11 : i64} {
  func.func @vae_forward_kernel(%arg0: i32, %arg1: memref<8x1024xf32, #tpu.memory_space<vmem>>, %arg2: memref<8x32xf32, #tpu.memory_space<vmem>>, %arg3: memref<1024x128xbf16, #tpu.memory_space<vmem>>, %arg4: memref<1x128xf32, #tpu.memory_space<vmem>>, %arg5: memref<128x128xbf16, #tpu.memory_space<vmem>>, %arg6: memref<1x128xf32, #tpu.memory_space<vmem>>, %arg7: memref<32x128xbf16, #tpu.memory_space<vmem>>, %arg8: memref<1x128xf32, #tpu.memory_space<vmem>>, %arg9: memref<128x1024xbf16, #tpu.memory_space<vmem>>, %arg10: memref<1x1024xf32, #tpu.memory_space<vmem>>, %arg11: memref<8x1024xf32, #tpu.memory_space<vmem>>, %arg12: memref<8x128xf32, #tpu.memory_space<vmem>>) attributes {dimension_semantics = [#tpu.dimension_semantics<parallel>], iteration_bounds = array<i64: 1>, scalar_prefetch = 0 : i64, scratch_operands = 0 : i64, tpu.core_type = #tpu.core_type<tc>, window_params = [{transform_indices = @transform_0, window_bounds = array<i64: 8, 1024>}, {transform_indices = @transform_1, window_bounds = array<i64: 8, 32>}, {pipeline_mode = #tpu.pipeline_mode<synchronous>, transform_indices = @transform_2, window_bounds = array<i64: 1024, 128>}, {pipeline_mode = #tpu.pipeline_mode<synchronous>, transform_indices = @transform_3, window_bounds = array<i64: 1, 128>}, {pipeline_mode = #tpu.pipeline_mode<synchronous>, transform_indices = @transform_4, window_bounds = array<i64: 128, 128>}, {pipeline_mode = #tpu.pipeline_mode<synchronous>, transform_indices = @transform_5, window_bounds = array<i64: 1, 128>}, {pipeline_mode = #tpu.pipeline_mode<synchronous>, transform_indices = @transform_6, window_bounds = array<i64: 32, 128>}, {pipeline_mode = #tpu.pipeline_mode<synchronous>, transform_indices = @transform_7, window_bounds = array<i64: 1, 128>}, {pipeline_mode = #tpu.pipeline_mode<synchronous>, transform_indices = @transform_8, window_bounds = array<i64: 128, 1024>}, {pipeline_mode = #tpu.pipeline_mode<synchronous>, transform_indices = @transform_9, window_bounds = array<i64: 1, 1024>}, {transform_indices = @transform_10, window_bounds = array<i64: 8, 1024>}, {transform_indices = @transform_11, window_bounds = array<i64: 8, 128>}]} {
    %c0 = arith.constant 0 : index
    %c0_0 = arith.constant 0 : index
    %0 = vector.load %arg1[%c0, %c0_0] : memref<8x1024xf32, #tpu.memory_space<vmem>>, vector<8x1024xf32>
    %1 = arith.truncf %0 : vector<8x1024xf32> to vector<8x1024xbf16>
    %c0_1 = arith.constant 0 : index
    %c0_2 = arith.constant 0 : index
    %2 = vector.load %arg3[%c0_1, %c0_2] : memref<1024x128xbf16, #tpu.memory_space<vmem>>, vector<1024x128xbf16>
    %cst = arith.constant dense<0.000000e+00> : vector<8x128xf32>
    %3 = tpu.matmul %1, %2, %cst {dimension_numbers = #tpu.dot_dimension_numbers<[1], [0], [0], [1], [0, 0, 1, 1], [], []>} : vector<8x1024xbf16>, vector<1024x128xbf16>, vector<8x128xf32> -> vector<8x128xf32>
    %c0_3 = arith.constant 0 : index
    %c0_4 = arith.constant 0 : index
    %4 = vector.load %arg4[%c0_3, %c0_4] : memref<1x128xf32, #tpu.memory_space<vmem>>, vector<1x128xf32>
    %5 = vector.broadcast %4 : vector<1x128xf32> to vector<8x128xf32>
    %6 = arith.addf %3, %5 : vector<8x128xf32>
    %cst_5 = arith.constant 0.000000e+00 : f32
    %7 = vector.broadcast %cst_5 : f32 to vector<8x128xf32>
    %8 = arith.maximumf %6, %7 : vector<8x128xf32>
    %9 = arith.truncf %8 : vector<8x128xf32> to vector<8x128xbf16>
    %c0_6 = arith.constant 0 : index
    %c0_7 = arith.constant 0 : index
    %10 = vector.load %arg5[%c0_6, %c0_7] : memref<128x128xbf16, #tpu.memory_space<vmem>>, vector<128x128xbf16>
    %cst_8 = arith.constant dense<0.000000e+00> : vector<8x128xf32>
    %11 = tpu.matmul %9, %10, %cst_8 {dimension_numbers = #tpu.dot_dimension_numbers<[1], [0], [0], [1], [0, 0, 1, 1], [], []>} : vector<8x128xbf16>, vector<128x128xbf16>, vector<8x128xf32> -> vector<8x128xf32>
    %c0_9 = arith.constant 0 : index
    %c0_10 = arith.constant 0 : index
    %12 = vector.load %arg6[%c0_9, %c0_10] : memref<1x128xf32, #tpu.memory_space<vmem>>, vector<1x128xf32>
    %13 = vector.broadcast %12 : vector<1x128xf32> to vector<8x128xf32>
    %14 = arith.addf %11, %13 : vector<8x128xf32>
    %c0_11 = arith.constant 0 : index
    %c0_12 = arith.constant 0 : index
    %15 = vector.load %arg12[%c0_11, %c0_12] : memref<8x128xf32, #tpu.memory_space<vmem>>, vector<8x128xf32>
    tpu.vector_store %arg12[%c0_11, %c0_12], %14 {strides = array<i32>} : memref<8x128xf32, #tpu.memory_space<vmem>>, vector<8x128xf32>,
    %16 = vector.extract_strided_slice %14 {offsets = [0, 0], sizes = [8, 32], strides = [1, 1]} : vector<8x128xf32> to vector<8x32xf32>
    %17 = vector.extract_strided_slice %14 {offsets = [0, 32], sizes = [8, 32], strides = [1, 1]} : vector<8x128xf32> to vector<8x32xf32>
    %cst_13 = arith.constant 5.000000e-01 : f32
    %18 = vector.broadcast %cst_13 : f32 to vector<8x32xf32>
    %19 = arith.mulf %18, %17 : vector<8x32xf32>
    %20 = math.exp %19 : vector<8x32xf32>
    %c0_14 = arith.constant 0 : index
    %c0_15 = arith.constant 0 : index
    %21 = vector.load %arg2[%c0_14, %c0_15] : memref<8x32xf32, #tpu.memory_space<vmem>>, vector<8x32xf32>
    %22 = arith.mulf %21, %20 : vector<8x32xf32>
    %23 = arith.addf %16, %22 : vector<8x32xf32>
    %24 = arith.truncf %23 : vector<8x32xf32> to vector<8x32xbf16>
    %c0_16 = arith.constant 0 : index
    %c0_17 = arith.constant 0 : index
    %25 = vector.load %arg7[%c0_16, %c0_17] : memref<32x128xbf16, #tpu.memory_space<vmem>>, vector<32x128xbf16>
    %cst_18 = arith.constant dense<0.000000e+00> : vector<8x128xf32>
    %26 = tpu.matmul %24, %25, %cst_18 {dimension_numbers = #tpu.dot_dimension_numbers<[1], [0], [0], [1], [0, 0, 1, 1], [], []>} : vector<8x32xbf16>, vector<32x128xbf16>, vector<8x128xf32> -> vector<8x128xf32>
    %c0_19 = arith.constant 0 : index
    %c0_20 = arith.constant 0 : index
    %27 = vector.load %arg8[%c0_19, %c0_20] : memref<1x128xf32, #tpu.memory_space<vmem>>, vector<1x128xf32>
    %28 = vector.broadcast %27 : vector<1x128xf32> to vector<8x128xf32>
    %29 = arith.addf %26, %28 : vector<8x128xf32>
    %cst_21 = arith.constant 0.000000e+00 : f32
    %30 = vector.broadcast %cst_21 : f32 to vector<8x128xf32>
    %31 = arith.maximumf %29, %30 : vector<8x128xf32>
    %32 = arith.truncf %31 : vector<8x128xf32> to vector<8x128xbf16>
    %c0_22 = arith.constant 0 : index
    %c0_23 = arith.constant 0 : index
    %33 = vector.load %arg9[%c0_22, %c0_23] : memref<128x1024xbf16, #tpu.memory_space<vmem>>, vector<128x1024xbf16>
    %cst_24 = arith.constant dense<0.000000e+00> : vector<8x1024xf32>
    %34 = tpu.matmul %32, %33, %cst_24 {dimension_numbers = #tpu.dot_dimension_numbers<[1], [0], [0], [1], [0, 0, 1, 1], [], []>} : vector<8x128xbf16>, vector<128x1024xbf16>, vector<8x1024xf32> -> vector<8x1024xf32>
    %c0_25 = arith.constant 0 : index
    %c0_26 = arith.constant 0 : index
    %35 = vector.load %arg10[%c0_25, %c0_26] : memref<1x1024xf32, #tpu.memory_space<vmem>>, vector<1x1024xf32>
    %36 = vector.broadcast %35 : vector<1x1024xf32> to vector<8x1024xf32>
    %37 = arith.addf %34, %36 : vector<8x1024xf32>
    %38 = arith.negf %37 : vector<8x1024xf32>
    %39 = math.exp %38 : vector<8x1024xf32>
    %cst_27 = arith.constant 1.000000e+00 : f32
    %40 = vector.broadcast %cst_27 : f32 to vector<8x1024xf32>
    %41 = arith.addf %40, %39 : vector<8x1024xf32>
    %42 = arith.divf %40, %41 : vector<8x1024xf32>
    %c0_28 = arith.constant 0 : index
    %c0_29 = arith.constant 0 : index
    %43 = vector.load %arg11[%c0_28, %c0_29] : memref<8x1024xf32, #tpu.memory_space<vmem>>, vector<8x1024xf32>
    tpu.vector_store %arg11[%c0_28, %c0_29], %42 {strides = array<i32>} : memref<8x1024xf32, #tpu.memory_space<vmem>>, vector<8x1024xf32>,
    return
  }
  func.func @transform_0(%arg0: i32) -> (i32, i32) {
    %c0_i32 = arith.constant 0 : i32
    %c0_i32_0 = arith.constant 0 : i32
    return %arg0, %c0_i32 : i32, i32
  }
  func.func @transform_1(%arg0: i32) -> (i32, i32) {
    %c0_i32 = arith.constant 0 : i32
    %c0_i32_0 = arith.constant 0 : i32
    return %arg0, %c0_i32 : i32, i32
  }
  func.func @transform_2(%arg0: i32) -> (i32, i32) {
    %c0_i32 = arith.constant 0 : i32
    %c0_i32_0 = arith.constant 0 : i32
    %c0_i32_1 = arith.constant 0 : i32
    return %c0_i32, %c0_i32_0 : i32, i32
  }
  func.func @transform_3(%arg0: i32) -> (i32, i32) {
    %c0_i32 = arith.constant 0 : i32
    %c0_i32_0 = arith.constant 0 : i32
    %c0_i32_1 = arith.constant 0 : i32
    return %c0_i32, %c0_i32_0 : i32, i32
  }
  func.func @transform_4(%arg0: i32) -> (i32, i32) {
    %c0_i32 = arith.constant 0 : i32
    %c0_i32_0 = arith.constant 0 : i32
    %c0_i32_1 = arith.constant 0 : i32
    return %c0_i32, %c0_i32_0 : i32, i32
  }
  func.func @transform_5(%arg0: i32) -> (i32, i32) {
    %c0_i32 = arith.constant 0 : i32
    %c0_i32_0 = arith.constant 0 : i32
    %c0_i32_1 = arith.constant 0 : i32
    return %c0_i32, %c0_i32_0 : i32, i32
  }
  func.func @transform_6(%arg0: i32) -> (i32, i32) {
    %c0_i32 = arith.constant 0 : i32
    %c0_i32_0 = arith.constant 0 : i32
    %c0_i32_1 = arith.constant 0 : i32
    return %c0_i32, %c0_i32_0 : i32, i32
  }
  func.func @transform_7(%arg0: i32) -> (i32, i32) {
    %c0_i32 = arith.constant 0 : i32
    %c0_i32_0 = arith.constant 0 : i32
    %c0_i32_1 = arith.constant 0 : i32
    return %c0_i32, %c0_i32_0 : i32, i32
  }
  func.func @transform_8(%arg0: i32) -> (i32, i32) {
    %c0_i32 = arith.constant 0 : i32
    %c0_i32_0 = arith.constant 0 : i32
    %c0_i32_1 = arith.constant 0 : i32
    return %c0_i32, %c0_i32_0 : i32, i32
  }
  func.func @transform_9(%arg0: i32) -> (i32, i32) {
    %c0_i32 = arith.constant 0 : i32
    %c0_i32_0 = arith.constant 0 : i32
    %c0_i32_1 = arith.constant 0 : i32
    return %c0_i32, %c0_i32_0 : i32, i32
  }
  func.func @transform_10(%arg0: i32) -> (i32, i32) {
    %c0_i32 = arith.constant 0 : i32
    %c0_i32_0 = arith.constant 0 : i32
    return %arg0, %c0_i32 : i32, i32
  }
  func.func @transform_11(%arg0: i32) -> (i32, i32) {
    %c0_i32 = arith.constant 0 : i32
    %c0_i32_0 = arith.constant 0 : i32
    return %arg0, %c0_i32 : i32, i32
  }
}

</mosaic_0001>

<bundles_post_ra>
// kernel: tpu_custom_call.1
= control target key start
LH: loop header
LB: loop body
LE: loop exit
PB: predicated region body
PF: predicated region fallthrough
CT: control target
= control target key end

     0   :  { %17 = vsyncpa [#allocation3], 0  ;;  %s2857_s0 = inlined_call_operand.hbm [shape: f32[8,1024], index: 0, kind: input, shape index: {}]   ;;  %s2858_s1 = inlined_call_operand.hbm [shape: f32[8,32], index: 1, kind: input, shape index: {}]   ;;  %s2859_s2 = inlined_call_operand.hbm [shape: bf16[1024,128], index: 2, kind: input, shape index: {}]   ;;  %s2860_s3 = inlined_call_operand.hbm [shape: f32[1,128], index: 3, kind: input, shape index: {}]   ;;  %s2861_s4 = inlined_call_operand.hbm [shape: bf16[128,128], index: 4, kind: input, shape index: {}]   ;;  %s2862_s5 = inlined_call_operand.hbm [shape: f32[1,128], index: 5, kind: input, shape index: {}]   ;;  %s2863_s6 = inlined_call_operand.hbm [shape: bf16[32,128], index: 6, kind: input, shape index: {}]   ;;  %s2864_s7 = inlined_call_operand.hbm [shape: f32[1,128], index: 7, kind: input, shape index: {}]   ;;  %s2865_s8 = inlined_call_operand.hbm [shape: bf16[128,1024], index: 8, kind: input, shape index: {}]   ;;  %s2866_s9 = inlined_call_operand.vmem [shape: f32[1,1024], index: 9, kind: input, shape index: {}]   ;;  %s2867_s10 = inlined_call_operand.hbm [shape: f32[8,1024], index: 10, kind: output, shape index: {0}]   ;;  %s2868_s11 = inlined_call_operand.hbm [shape: f32[8,128], index: 11, kind: output, shape index: {1}]  }
   0x1   :  { %18 = vsyncpa [#allocation6], 0 }
   0x2   :  { %19 = vsyncpa [#allocation9], 0 }
   0x3   :  { %20 = vsyncpa [#allocation12], 0 }
   0x4   :  { %21 = vsyncpa [#allocation15], 0 }
   0x5   :  { %22 = vsyncpa [#allocation4], 0  ;;  %s40_s19 = sshll.u32 %s2858_s1, 4  ;;  %s41_s19 = int_to_ptr.hbm [resolvable:$true] %s40_s19 }
   0x6   :  { %23 = vsyncpa [#allocation19], 0  ;;  %s2673_s20 = smov [#allocation5]   ;;  %s64_s24 = sshll.u32 %s2860_s3, 4  ;;  %s65_s24 = int_to_ptr.hbm [resolvable:$true] %s64_s24 }
   0x7   :  { %s42_s21 = sshll.u32 %s2673_s20, 4  ;;  %s2674_s25 = smov [#allocation8]   ;;  %s43_s21 = int_to_ptr.vmem [resolvable:$true] %s42_s21 }
   0x8   :  { %45 = dma.hbm_to_vmem [thread:$0]  %s41_s19, 128, %s43_s21, [#allocation6]  }
   0x9   :  { %s66_s26 = sshll.u32 %s2674_s25, 4  ;;  %s88_s29 = sshll.u32 %s2862_s5, 4  ;;  %s67_s26 = int_to_ptr.vmem [resolvable:$true] %s66_s26  ;;  %s89_s29 = int_to_ptr.hbm [resolvable:$true] %s88_s29 }
   0xa   :  { %69 = dma.hbm_to_vmem [thread:$0]  %s65_s24, 16, %s67_s26, [#allocation9]  }
   0xb   :  { %s112_s12 = sshll.u32 %s2864_s7, 4  ;;  %s2675_s13 = smov [#allocation11]   ;;  %s113_s12 = int_to_ptr.hbm [resolvable:$true] %s112_s12 }
   0xc   :  { %s90_s14 = sshll.u32 %s2675_s13, 4  ;;  %s2676_s3 = smov [#allocation14]   ;;  %s91_s14 = int_to_ptr.vmem [resolvable:$true] %s90_s14 }
   0xd   :  { %93 = dma.hbm_to_vmem [thread:$0]  %s89_s29, 16, %s91_s14, [#allocation12]  }
   0xe   :  { %s114_s15 = sshll.u32 %s2676_s3, 4  ;;  %s29_s18 = sshll.u32 %s2857_s0, 4  ;;  %s115_s15 = int_to_ptr.vmem [resolvable:$true] %s114_s15  ;;  %s30_s18 = int_to_ptr.hbm [resolvable:$true] %s29_s18 }
   0xf   :  { %117 = dma.hbm_to_vmem [thread:$0]  %s113_s12, 16, %s115_s15, [#allocation15]  }
  0x10   :  { %s50_s20 = sshll.u32 %s2859_s2, 4  ;;  %s2677_s21 = smov [#allocation2]   ;;  %s51_s20 = int_to_ptr.hbm [resolvable:$true] %s50_s20 }
  0x11   :  { %s31_s7 = sshll.u32 %s2677_s21, 4  ;;  %s2678_s22 = smov [#allocation7]   ;;  %s32_s7 = int_to_ptr.vmem [resolvable:$true] %s31_s7 }
  0x12   :  { %34 = dma.hbm_to_vmem [thread:$0]  %s30_s18, 1024, %s32_s7, [#allocation3]  }
  0x13   :  { %s52_s23 = sshll.u32 %s2678_s22, 4  ;;  %s2679_s24 = smov 64   ;;  %s53_s23 = int_to_ptr.vmem [resolvable:$true] %s52_s23 }
  0x14   :  { %s2680_s25 = smov 4   ;;  %s74_s27 = sshll.u32 %s2861_s4, 4  ;;  %s75_s27 = int_to_ptr.hbm [resolvable:$true] %s74_s27 }
  0x15   :  { %58 = dma.hbm_to_vmem [thread:$0]  %s51_s20, 8192, %s53_s23, [#allocation6], %s2679_s24, %s2679_s24, %s2680_s25  }
  0x16   :  { %s2681_s28 = smov [#allocation10]   ;;  %s98_s30 = sshll.u32 %s2863_s6, 4  ;;  %s99_s30 = int_to_ptr.hbm [resolvable:$true] %s98_s30 }
  0x17   :  { %s76_s29 = sshll.u32 %s2681_s28, 4  ;;  %s2682_s12 = smov [#allocation13]   ;;  %s77_s29 = int_to_ptr.vmem [resolvable:$true] %s76_s29 }
  0x18   :  { %82 = dma.hbm_to_vmem [thread:$0]  %s75_s27, 1024, %s77_s29, [#allocation9], %s2679_s24, %s2679_s24, %s2680_s25  }
  0x19   :  { %s100_s13 = sshll.u32 %s2682_s12, 4  ;;  %s122_s15 = sshll.u32 %s2865_s8, 4  ;;  %s101_s13 = int_to_ptr.vmem [resolvable:$true] %s100_s13  ;;  %s123_s15 = int_to_ptr.hbm [resolvable:$true] %s122_s15 }
  0x1a   :  { %106 = dma.hbm_to_vmem [thread:$0]  %s99_s30, 256, %s101_s13, [#allocation12], %s2679_s24, %s2679_s24, %s2680_s25  }
  0x1b   :  { %s2683_s4 = smov [#allocation16]   ;;  %s2684_s17 = smov 512  }
  0x1c   :  { %s124_s16 = sshll.u32 %s2683_s4, 4  ;;  %s2685_s18 = smov 32   ;;  %s125_s16 = int_to_ptr.vmem [resolvable:$true] %s124_s16 }
  0x1d   :  { %130 = dma.hbm_to_vmem [thread:$0]  %s123_s15, 8192, %s125_s16, [#allocation15], %s2684_s17, %s2684_s17, %s2685_s18  }
  0x1e   :  { %2659 = dma.done.wait [#allocation3], 1024  }
  0x1f   :  { %2660 = vsyncadd [#allocation3], 4294966272 }
  0x20   :  { %2661 = dma.done.wait [#allocation6], 8320  }
  0x21   :  { %2662 = vsyncadd [#allocation6], 4294958976 }
  0x22   :  { %2663 = dma.done.wait [#allocation9], 1040  }
  0x23   :  { %2664 = vsyncadd [#allocation9], 4294966256 }
  0x24   :  { %2665 = dma.done.wait [#allocation12], 272  }
  0x25   :  { %2666 = vsyncadd [#allocation12], 4294967024 }
  0x26   :  { %2667 = dma.done.wait [#allocation15], 8208  }
  0x27   :  { %2668 = vsyncadd [#allocation15], 4294959088  ;;  %v2211_v0 = vld [vmem:[#allocation7 + $0x38] sm:$0xff]  ;;  %v2210_v4 = vld [vmem:[#allocation7 + $0x30] sm:$0xff]  ;;  %s2686_s6 = smov 96   ;;  %vm921_vm0 = vcmask 261120  }
  0x28   :  { %v2219_v1 = vld [vmem:[#allocation7 + $0x78] sm:$0xff]  ;;  %702 = vmatpush.bf16.msra.mxu0 %v2211_v0  ;;  %v2218_v5 = vld [vmem:[#allocation7 + $0x70] sm:$0xff]  ;;  %v2209_v8 = vld [vmem:[#allocation7 + $0x28] sm:$0xff]  ;;  %s2687_s8 = smov [#allocation18]   ;;  %s1624_s21 = sshll.u32 %s2868_s11, 4  ;;  %s1625_s21 = int_to_ptr.hbm [resolvable:$true] %s1624_s21 }
  0x29   :  { %v2227_v2 = vld [vmem:[#allocation7 + $0xb8] sm:$0xff]  ;;  %715 = vmatpush.bf16.msra.mxu1 %v2219_v1  ;;  %v2226_v6 = vld [vmem:[#allocation7 + $0xb0] sm:$0xff]  ;;  %v2217_v9 = vld [vmem:[#allocation7 + $0x68] sm:$0xff]  ;;  %s1622_s5 = sshll.u32 %s2687_s8, 4  ;;  %s1613_s25 = sshll.u32 %s2867_s10, 4  ;;  %s1623_s5 = int_to_ptr.vmem [resolvable:$true] %s1622_s5  ;;  %s1614_s25 = int_to_ptr.hbm [resolvable:$true] %s1613_s25 }
  0x2a   :  { %v2235_v3 = vld [vmem:[#allocation7 + $0xf8] sm:$0xff]  ;;  %728 = vmatpush.bf16.msra.mxu2 %v2227_v2  ;;  %v2234_v7 = vld [vmem:[#allocation7 + $0xf0] sm:$0xff]  ;;  %v2225_v10 = vld [vmem:[#allocation7 + $0xa8] sm:$0xff] }
  0x2b   :  { %741 = vmatpush.bf16.msra.mxu3 %v2235_v3  ;;  %v2233_v11 = vld [vmem:[#allocation7 + $0xe8] sm:$0xff]  ;;  %v2208_v12 = vld [vmem:[#allocation7 + $0x20] sm:$0xff]  ;;  %v2207_v16 = vld [vmem:[#allocation7 + $0x18] sm:$0xff] }
  0x2c   :  { %703 = vmatpush.bf16.msra.mxu0 %v2210_v4  ;;  %v2216_v13 = vld [vmem:[#allocation7 + $0x60] sm:$0xff]  ;;  %v2215_v17 = vld [vmem:[#allocation7 + $0x58] sm:$0xff]  ;;  %v2206_v20 = vld [vmem:[#allocation7 + $0x10] sm:$0xff] }
  0x2d   :  { %716 = vmatpush.bf16.msra.mxu1 %v2218_v5  ;;  %v2224_v14 = vld [vmem:[#allocation7 + $0xa0] sm:$0xff]  ;;  %v2223_v18 = vld [vmem:[#allocation7 + $0x98] sm:$0xff]  ;;  %v2214_v21 = vld [vmem:[#allocation7 + $0x50] sm:$0xff] }
  0x2e   :  { %729 = vmatpush.bf16.msra.mxu2 %v2226_v6  ;;  %v2232_v15 = vld [vmem:[#allocation7 + $0xe0] sm:$0xff]  ;;  %v2231_v19 = vld [vmem:[#allocation7 + $0xd8] sm:$0xff]  ;;  %v2222_v22 = vld [vmem:[#allocation7 + $0x90] sm:$0xff] }
  0x2f   :  { %742 = vmatpush.bf16.msra.mxu3 %v2234_v7  ;;  %v2230_v23 = vld [vmem:[#allocation7 + $0xd0] sm:$0xff]  ;;  %v2205_v24 = vld [vmem:[#allocation7 + $0x8] sm:$0xff]  ;;  %v2204_v28 = vld [vmem:[#allocation7] sm:$0xff] }
  0x30   :  { %704 = vmatpush.bf16.msra.mxu0 %v2209_v8  ;;  %v2213_v25 = vld [vmem:[#allocation7 + $0x48] sm:$0xff]  ;;  %v2212_v29 = vld [vmem:[#allocation7 + $0x40] sm:$0xff]  ;;  %v2243_v32 = vld [vmem:[#allocation7 + $0x138] sm:$0xff] }
  0x31   :  { %717 = vmatpush.bf16.msra.mxu1 %v2217_v9  ;;  %v2221_v26 = vld [vmem:[#allocation7 + $0x88] sm:$0xff]  ;;  %v2220_v30 = vld [vmem:[#allocation7 + $0x80] sm:$0xff]  ;;  %v170_v34 = vld [vmem:[#allocation2] sm:$0xff] }
  0x32   :  { %730 = vmatpush.bf16.msra.mxu2 %v2225_v10  ;;  %v2229_v27 = vld [vmem:[#allocation7 + $0xc8] sm:$0xff]  ;;  %v2228_v31 = vld [vmem:[#allocation7 + $0xc0] sm:$0xff]  ;;  %v2251_v35 = vld [vmem:[#allocation7 + $0x178] sm:$0xff]  ;;  %v178_v41 = vpack.c.bf16 %v170_v34, %v170_v34 }
  0x33   :  { %743 = vmatpush.bf16.msra.mxu3 %v2233_v11  ;;  %v172_v33 = vld [vmem:[#allocation2 + $0x10] sm:$0xff]  ;;  %v173_v36 = vld [vmem:[#allocation2 + $0x18] sm:$0xff]  ;;  %v171_v37 = vld [vmem:[#allocation2 + $0x8] sm:$0xff] }
  0x34   :  { %705 = vmatpush.bf16.msra.mxu0 %v2208_v12  ;;  %v2259_v38 = vld [vmem:[#allocation7 + $0x1b8] sm:$0xff]  ;;  %v180_v40 = vpack.c.bf16 %v172_v33, %v172_v33  ;;  %v181_v42 = vpack.c.bf16 %v173_v36, %v173_v36  ;;  %v179_v43 = vpack.c.bf16 %v171_v37, %v171_v37  ;;  %v2242_v44 = vld [vmem:[#allocation7 + $0x130] sm:$0xff]  ;;  %v2241_v48 = vld [vmem:[#allocation7 + $0x128] sm:$0xff] }
  0x35   :  { %718 = vmatpush.bf16.msra.mxu1 %v2216_v13  ;;  %v2267_v39 = vld [vmem:[#allocation7 + $0x1f8] sm:$0xff]  ;;  %v2250_v45 = vld [vmem:[#allocation7 + $0x170] sm:$0xff]  ;;  %v2249_v49 = vld [vmem:[#allocation7 + $0x168] sm:$0xff] }
  0x36   :  { %731 = vmatpush.bf16.msra.mxu2 %v2224_v14  ;;  %v2258_v46 = vld [vmem:[#allocation7 + $0x1b0] sm:$0xff]  ;;  %v2257_v50 = vld [vmem:[#allocation7 + $0x1a8] sm:$0xff]  ;;  %v2240_v52 = vld [vmem:[#allocation7 + $0x120] sm:$0xff] }
  0x37   :  { %744 = vmatpush.bf16.msra.mxu3 %v2232_v15  ;;  %v2266_v47 = vld [vmem:[#allocation7 + $0x1f0] sm:$0xff]  ;;  %v2265_v51 = vld [vmem:[#allocation7 + $0x1e8] sm:$0xff]  ;;  %v2248_v53 = vld [vmem:[#allocation7 + $0x160] sm:$0xff] }
  0x38   :  { %706 = vmatpush.bf16.msra.mxu0 %v2207_v16  ;;  %v2256_v54 = vld [vmem:[#allocation7 + $0x1a0] sm:$0xff]  ;;  %v2239_v56 = vld [vmem:[#allocation7 + $0x118] sm:$0xff]  ;;  %v2238_v60 = vld [vmem:[#allocation7 + $0x110] sm:$0xff] }
  0x39   :  { %719 = vmatpush.bf16.msra.mxu1 %v2215_v17  ;;  %v2264_v55 = vld [vmem:[#allocation7 + $0x1e0] sm:$0xff]  ;;  %v2247_v57 = vld [vmem:[#allocation7 + $0x158] sm:$0xff]  ;;  %v2246_v61 = vld [vmem:[#allocation7 + $0x150] sm:$0xff] }
  0x3a   :  { %732 = vmatpush.bf16.msra.mxu2 %v2223_v18  ;;  %v2255_v58 = vld [vmem:[#allocation7 + $0x198] sm:$0xff]  ;;  %v2254_v62 = vld [vmem:[#allocation7 + $0x190] sm:$0xff]  ;;  %v2237_v0 = vld [vmem:[#allocation7 + $0x108] sm:$0xff] }
  0x3b   :  { %745 = vmatpush.bf16.msra.mxu3 %v2231_v19  ;;  %v2263_v59 = vld [vmem:[#allocation7 + $0x1d8] sm:$0xff]  ;;  %v2262_v63 = vld [vmem:[#allocation7 + $0x1d0] sm:$0xff]  ;;  %v2245_v1 = vld [vmem:[#allocation7 + $0x148] sm:$0xff] }
  0x3c   :  { %707 = vmatpush.bf16.msra.mxu0 %v2206_v20  ;;  %v2253_v2 = vld [vmem:[#allocation7 + $0x188] sm:$0xff]  ;;  %v2236_v4 = vld [vmem:[#allocation7 + $0x100] sm:$0xff]  ;;  %v174_v7 = vld [vmem:[#allocation2 + $0x20] sm:$0xff] }
  0x3d   :  { %720 = vmatpush.bf16.msra.mxu1 %v2214_v21  ;;  %v2261_v3 = vld [vmem:[#allocation7 + $0x1c8] sm:$0xff]  ;;  %v2244_v5 = vld [vmem:[#allocation7 + $0x140] sm:$0xff]  ;;  %v177_v11 = vld [vmem:[#allocation2 + $0x38] sm:$0xff]  ;;  %v182_v12 = vpack.c.bf16 %v174_v7, %v174_v7 }
  0x3e   :  { %733 = vmatpush.bf16.msra.mxu2 %v2222_v22  ;;  %v2252_v6 = vld [vmem:[#allocation7 + $0x180] sm:$0xff]  ;;  %v176_v10 = vld [vmem:[#allocation2 + $0x30] sm:$0xff]  ;;  %v185_v15 = vpack.c.bf16 %v177_v11, %v177_v11  ;;  %v2274_v17 = vld [vmem:[#allocation10 + $0x30] sm:$0xff] }
  0x3f   :  { %746 = vmatpush.bf16.msra.mxu3 %v2230_v23  ;;  %v175_v8 = vld [vmem:[#allocation2 + $0x28] sm:$0xff]  ;;  %v184_v14 = vpack.c.bf16 %v176_v10, %v176_v10  ;;  %v2273_v18 = vld [vmem:[#allocation10 + $0x28] sm:$0xff]  ;;  %v2270_v22 = vld [vmem:[#allocation10 + $0x10] sm:$0xff] }
  0x40   :  { %708 = vmatpush.bf16.msra.mxu0 %v2205_v24  ;;  %v2260_v9 = vld [vmem:[#allocation7 + $0x1c0] sm:$0xff]  ;;  %v183_v13 = vpack.c.bf16 %v175_v8, %v175_v8  ;;  %v2269_v24 = vld [vmem:[#allocation10 + $0x8] sm:$0xff]  ;;  %v2134_v7 = vld [vmem:[#allocation16 + $0x180] sm:$0xf] }
  0x41   :  { %721 = vmatpush.bf16.msra.mxu1 %v2213_v25  ;;  %v2275_v16 = vld [vmem:[#allocation10 + $0x38] sm:$0xff]  ;;  %v2272_v19 = vld [vmem:[#allocation10 + $0x20] sm:$0xff] }
  0x42   :  { %734 = vmatpush.bf16.msra.mxu2 %v2221_v26  ;;  %v2271_v20 = vld [vmem:[#allocation10 + $0x18] sm:$0xff] }
  0x43   :  { %747 = vmatpush.bf16.msra.mxu3 %v2229_v27  ;;  %v2326_v10 = vld [vmem:[#allocation16 + $0x184] sm:$0xf] }
  0x44   :  { %709 = vmatpush.bf16.msra.mxu0 %v2204_v28  ;;  %v2268_v28 = vld [vmem:[#allocation10] sm:$0xff]  ;;  %v2136_v11 = vld [vmem:[#allocation16 + $0x1a0] sm:$0xf0] }
  0x45   :  { %722 = vmatpush.bf16.msra.mxu1 %v2212_v29 }
  0x46   :  { %735 = vmatpush.bf16.msra.mxu2 %v2220_v30  ;;  %v2358_v30 = vld [vmem:[#allocation8] ss:$0 sm:$0xff] }
  0x47   :  { %748 = vmatpush.bf16.msra.mxu3 %v2228_v31  ;;  %710 = vmatmul.bf16.vlgmr.msra.gmra.mxu0 %v178_v41 }
  0x48   :  { %754 = vmatpush.bf16.msrb.mxu0 %v2243_v32  ;;  %723 = vmatmul.bf16.vlgmr.msra.gmra.mxu1 %v179_v43 }
  0x49   :  { %767 = vmatpush.bf16.msrb.mxu1 %v2251_v35  ;;  %736 = vmatmul.bf16.vlgmr.msra.gmra.mxu2 %v180_v40 }
  0x4a   :  { %780 = vmatpush.bf16.msrb.mxu2 %v2259_v38  ;;  %749 = vmatmul.bf16.vlgmr.msra.gmra.mxu3 %v181_v42 }
  0x4b   :  { %793 = vmatpush.bf16.msrb.mxu3 %v2267_v39 }
  0x4c   :  { %755 = vmatpush.bf16.msrb.mxu0 %v2242_v44 }
  0x4d   :  { %768 = vmatpush.bf16.msrb.mxu1 %v2250_v45 }
  0x4e   :  { %781 = vmatpush.bf16.msrb.mxu2 %v2258_v46 }
  0x4f   :  { %794 = vmatpush.bf16.msrb.mxu3 %v2266_v47 }
  0x50   :  { %756 = vmatpush.bf16.msrb.mxu0 %v2241_v48 }
  0x51   :  { %769 = vmatpush.bf16.msrb.mxu1 %v2249_v49 }
  0x52   :  { %782 = vmatpush.bf16.msrb.mxu2 %v2257_v50 }
  0x53   :  { %795 = vmatpush.bf16.msrb.mxu3 %v2265_v51  ;;  %v2277_v51 = vld [vmem:[#allocation13 + $0x8] sm:$0xff] }
  0x54   :  { %757 = vmatpush.bf16.msrb.mxu0 %v2240_v52  ;;  %v2276_v52 = vld [vmem:[#allocation13] sm:$0xff] }
  0x55   :  { %770 = vmatpush.bf16.msrb.mxu1 %v2248_v53  ;;  %v2359_v53 = vld [vmem:[#allocation11] ss:$0 sm:$0xff] }
  0x56   :  { %783 = vmatpush.bf16.msrb.mxu2 %v2256_v54 }
  0x57   :  { %796 = vmatpush.bf16.msrb.mxu3 %v2264_v55 }
  0x58   :  { %758 = vmatpush.bf16.msrb.mxu0 %v2239_v56 }
  0x59   :  { %771 = vmatpush.bf16.msrb.mxu1 %v2247_v57 }
  0x5a   :  { %784 = vmatpush.bf16.msrb.mxu2 %v2255_v58 }
  0x5b   :  { %797 = vmatpush.bf16.msrb.mxu3 %v2263_v59 }
  0x5c   :  { %759 = vmatpush.bf16.msrb.mxu0 %v2238_v60  ;;  %v2166_v60 = vld [vmem:[#allocation16 + $0x1c0] sm:$0xf] }
  0x5d   :  { %772 = vmatpush.bf16.msrb.mxu1 %v2246_v61  ;;  %v2338_v61 = vld [vmem:[#allocation16 + $0x1dc] sm:$0xf0] }
  0x5e   :  { %785 = vmatpush.bf16.msrb.mxu2 %v2254_v62  ;;  %v2334_v62 = vld [vmem:[#allocation16 + $0x1c4] sm:$0xf] }
  0x5f   :  { %798 = vmatpush.bf16.msrb.mxu3 %v2262_v63  ;;  %v2167_v63 = vor.u32 %v2338_v61, %v2166_v60  ;;  %v2008_v60 = vld [vmem:[#allocation16 + $0xa0] sm:$0xf0]  ;;  %v2014_v61 = vld [vmem:[#allocation16 + $0x88] sm:$0xf] }
  0x60   :  { %760 = vmatpush.bf16.msrb.mxu0 %v2237_v0  ;;  %v2168_v0 = vld [vmem:[#allocation16 + $0x1e0] sm:$0xf0] }
  0x61   :  { %773 = vmatpush.bf16.msrb.mxu1 %v2245_v1  ;;  %v2174_v1 = vld [vmem:[#allocation16 + $0x1c8] sm:$0xf] }
  0x62   :  { %786 = vmatpush.bf16.msrb.mxu2 %v2253_v2  ;;  %v2339_v2 = vld [vmem:[#allocation16 + $0x1e4] sm:$0xf0] }
  0x63   :  { %799 = vmatpush.bf16.msrb.mxu3 %v2261_v3  ;;  %v2171_v3 = vor.u32 %v2334_v62, %v2168_v0  ;;  %v2299_v62 = vld [vmem:[#allocation16 + $0xa4] sm:$0xf0]  ;;  %v2016_v0 = vld [vmem:[#allocation16 + $0xa8] sm:$0xf0] }
  0x64   :  { %761 = vmatpush.bf16.msrb.mxu0 %v2236_v4  ;;  %v2175_v4 = vor.u32 %v2339_v2, %v2174_v1 }
  0x65   :  { %774 = vmatpush.bf16.msrb.mxu1 %v2244_v5  ;;  %v2335_v5 = vld [vmem:[#allocation16 + $0x1cc] sm:$0xf] }
  0x66   :  { %787 = vmatpush.bf16.msrb.mxu2 %v2252_v6  ;;  %v2176_v6 = vld [vmem:[#allocation16 + $0x1e8] sm:$0xf0] }
  0x67   :  { %800 = vmatpush.bf16.msrb.mxu3 %v2260_v9  ;;  %762 = vmatmul.bf16.vlgmr.msrb.gmra.mxu0 %v182_v12  ;;  %v2179_v8 = vor.u32 %v2335_v5, %v2176_v6  ;;  %v2330_v9 = vld [vmem:[#allocation16 + $0x19c] sm:$0xf0]  ;;  %v2286_v6 = vld [vmem:[#allocation16 + $0x44] sm:$0xf] }
  0x68   :  { %775 = vmatmul.bf16.vlgmr.msrb.gmra.mxu1 %v183_v13  ;;  %876 = vmatpush.bf16.msra.mxu0 %v2275_v16  ;;  %v2135_v12 = vor.u32 %v2330_v9, %v2134_v7  ;;  %v2139_v13 = vor.u32 %v2326_v10, %v2136_v11  ;;  %v2327_v16 = vld [vmem:[#allocation16 + $0x18c] sm:$0xf]  ;;  %v2290_v5 = vld [vmem:[#allocation16 + $0x5c] sm:$0xf0]  ;;  %v1982_v9 = vld [vmem:[#allocation16 + $0x48] sm:$0xf] }
  0x69   :  { %788 = vmatmul.bf16.vlgmr.msrb.gmra.mxu2 %v184_v14  ;;  %931 = vmatpush.bf16.msra.mxu1 %v2277_v51  ;;  %v2142_v14 = vld [vmem:[#allocation16 + $0x188] sm:$0xf]  ;;  %v2048_v51 = vld [vmem:[#allocation16 + $0xe8] sm:$0xf0] }
  0x6a   :  { %801 = vmatmul.bf16.vlgmr.msrb.gmra.mxu3 %v185_v15  ;;  %1342 = vmatpush.bf16.msra.mxu2 %v2167_v63  ;;  %v2331_v15 = vld [vmem:[#allocation16 + $0x1a4] sm:$0xf0]  ;;  %v2295_v63 = vld [vmem:[#allocation16 + $0x8c] sm:$0xf] }
  0x6b   :  { %1355 = vmatpush.bf16.msra.mxu3 %v2171_v3  ;;  %v2015_v3 = vor.u32 %v2299_v62, %v2014_v61  ;;  %v2019_v7 = vor.u32 %v2295_v63, %v2016_v0  ;;  %v2291_v10 = vld [vmem:[#allocation16 + $0x64] sm:$0xf0]  ;;  %v2287_v11 = vld [vmem:[#allocation16 + $0x4c] sm:$0xf]  ;;  %v2120_v62 = vld [vmem:[#allocation16 + $0x170] sm:$0xf0] }
  0x6c   :  { %877 = vmatpush.bf16.msra.mxu0 %v2274_v17  ;;  %v2143_v17 = vor.u32 %v2331_v15, %v2142_v14  ;;  %v1942_v15 = vld [vmem:[#allocation16] sm:$0xf]  ;;  %v2126_v63 = vld [vmem:[#allocation16 + $0x158] sm:$0xf] }
  0x6d   :  { %932 = vmatpush.bf16.msra.mxu1 %v2276_v52  ;;  %v2325_v0 = vld [vmem:[#allocation16 + $0x174] sm:$0xf0] }
  0x6e   :  { %1343 = vmatpush.bf16.msra.mxu2 %v2135_v12  ;;  %v1984_v12 = vld [vmem:[#allocation16 + $0x68] sm:$0xf0] }
  0x6f   :  { %1356 = vmatpush.bf16.msra.mxu3 %v2139_v13  ;;  %v893_v13 = vld [vmem:[#allocation5] sm:$0xff] }
  0x70   :  { %878 = vmatpush.bf16.msra.mxu0 %v2273_v18  ;;  %v2144_v18 = vld [vmem:[#allocation16 + $0x1a8] sm:$0xf0] }
  0x71   :  { %1368 = vmatpush.bf16.msrb.mxu1 %v2175_v4  ;;  %v1974_v4 = vld [vmem:[#allocation16 + $0x40] sm:$0xf] }
  0x72   :  { %v1975_v14 = vor.u32 %v2290_v5, %v1974_v4  ;;  %v2128_v4 = vld [vmem:[#allocation16 + $0x178] sm:$0xf0] }
  0x74   :  { %879 = vmatpush.bf16.msra.mxu0 %v2272_v19  ;;  %v2102_v19 = vld [vmem:[#allocation16 + $0x140] sm:$0xf] }
  0x75   :  { %1369 = vmatpush.bf16.msrb.mxu1 %v2143_v17  ;;  %v1983_v17 = vor.u32 %v2291_v10, %v1982_v9  ;;  %v2088_v10 = vld [vmem:[#allocation16 + $0x130] sm:$0xf0] }
  0x78   :  { %880 = vmatpush.bf16.msra.mxu0 %v2271_v20  ;;  %v2322_v20 = vld [vmem:[#allocation16 + $0x15c] sm:$0xf0] }
  0x7c   :  { %881 = vmatpush.bf16.msra.mxu0 %v2270_v22  ;;  %v2318_v22 = vld [vmem:[#allocation16 + $0x144] sm:$0xf] }
  0x80   :  { %882 = vmatpush.bf16.msra.mxu0 %v2269_v24  ;;  %v2110_v24 = vld [vmem:[#allocation16 + $0x148] sm:$0xf] }
  0x84   :  { %883 = vmatpush.bf16.msra.mxu0 %v2268_v28  ;;  %v2112_v28 = vld [vmem:[#allocation16 + $0x168] sm:$0xf0] }
  0x88   :  { %1381 = vmatpush.bf16.msrb.mxu0 %v2179_v8  ;;  %v1976_v8 = vld [vmem:[#allocation16 + $0x60] sm:$0xf0] }
  0xc4   :  { %v711_v21 = vpop.f32.mrf.mxu0 }
  0xc5   :  { %v724_v23 = vpop.f32.mrf.mxu1  ;;  %v712_v33 = vadd.f32 %v2358_v30, %v711_v21  ;;  %v2147_v21 = vor.u32 %v2327_v16, %v2144_v18  ;;  %v1979_v16 = vor.u32 %v2286_v6, %v1976_v8  ;;  %v2282_v18 = vld [vmem:[#allocation16 + $0x1c] sm:$0xf0]  ;;  %v2086_v6 = vld [vmem:[#allocation16 + $0x110] sm:$0xf]  ;;  %v2312_v8 = vld [vmem:[#allocation16 + $0x114] sm:$0xf] }
  0xc7   :  { %v725_v34 = vadd.f32 %v724_v23, %v712_v33  ;;  %v2104_v23 = vld [vmem:[#allocation16 + $0x160] sm:$0xf0]  ;;  %1382 = vmatpush.bf16.msrb.mxu0 %v2147_v21 }
  0xc8   :  { %v2310_v33 = vld [vmem:[#allocation16 + $0x104] sm:$0xf] }
  0xcc   :  { %v737_v25 = vpop.f32.mrf.mxu2  ;;  %v713_v27 = vpop.f32.mrf.mxu0 }
  0xcd   :  { %v750_v26 = vpop.f32.mrf.mxu3  ;;  %v726_v29 = vpop.f32.mrf.mxu1  ;;  %v738_v35 = vadd.f32 %v737_v25, %v725_v34  ;;  %v2103_v25 = vor.u32 %v2322_v20, %v2102_v19  ;;  %v2319_v27 = vld [vmem:[#allocation16 + $0x14c] sm:$0xf]  ;;  %v2278_v19 = vld [vmem:[#allocation16 + $0x4] sm:$0xf] }
  0xce   :  { %v2107_v29 = vor.u32 %v2318_v22, %v2104_v23  ;;  %v2115_v34 = vor.u32 %v2319_v27, %v2112_v28  ;;  %v1944_v20 = vld [vmem:[#allocation16 + $0x20] sm:$0xf0]  ;;  %v1987_v22 = vor.u32 %v2287_v11, %v1984_v12  ;;  %v1950_v23 = vld [vmem:[#allocation16 + $0x8] sm:$0xf]  ;;  %v1952_v27 = vld [vmem:[#allocation16 + $0x28] sm:$0xf0] }
  0xcf   :  { %v751_v36 = vadd.f32 %v750_v26, %v738_v35  ;;  %v2323_v26 = vld [vmem:[#allocation16 + $0x164] sm:$0xf0]  ;;  %v2072_v35 = vld [vmem:[#allocation16 + $0x120] sm:$0xf0]  ;;  %1344 = vmatpush.bf16.msra.mxu2 %v2103_v25  ;;  %v2279_v25 = vld [vmem:[#allocation16 + $0xc] sm:$0xf] }
  0xd0   :  { %v2111_v30 = vor.u32 %v2323_v26, %v2110_v24  ;;  %1357 = vmatpush.bf16.msra.mxu3 %v2107_v29  ;;  %1383 = vmatpush.bf16.msrb.mxu0 %v2115_v34  ;;  %v2283_v24 = vld [vmem:[#allocation16 + $0x24] sm:$0xf0]  ;;  %v2182_v28 = vld [vmem:[#allocation16 + $0x1d0] sm:$0xf]  ;;  %v2094_v11 = vld [vmem:[#allocation16 + $0x118] sm:$0xf] }
  0xd1   :  { %v2340_v29 = vld [vmem:[#allocation16 + $0x1ec] sm:$0xf0]  ;;  %v2317_v12 = vld [vmem:[#allocation16 + $0x134] sm:$0xf0] }
  0xd2   :  { %1370 = vmatpush.bf16.msrb.mxu1 %v2111_v30  ;;  %v1943_v30 = vor.u32 %v2282_v18, %v1942_v15  ;;  %v2313_v15 = vld [vmem:[#allocation16 + $0x11c] sm:$0xf]  ;;  %v2054_v18 = vld [vmem:[#allocation16 + $0xd0] sm:$0xf] }
  0xd4   :  { %v739_v31 = vpop.f32.mrf.mxu2 }
  0xd5   :  { %v752_v32 = vpop.f32.mrf.mxu3  ;;  %v2070_v31 = vld [vmem:[#allocation16 + $0x100] sm:$0xf] }
  0xd6   :  { %v2314_v32 = vld [vmem:[#allocation16 + $0x11c] sm:$0xf0] }
  0xe4   :  { %v763_v37 = vpop.f32.mrf.mxu0 }
  0xe5   :  { %v776_v38 = vpop.f32.mrf.mxu1  ;;  %v764_v39 = vadd.f32 %v763_v37, %v751_v36  ;;  %v2078_v36 = vld [vmem:[#allocation16 + $0x108] sm:$0xf] }
  0xe6   :  { %v2315_v37 = vld [vmem:[#allocation16 + $0x124] sm:$0xf0] }
  0xe7   :  { %v777_v40 = vadd.f32 %v776_v38, %v764_v39  ;;  %v2311_v38 = vld [vmem:[#allocation16 + $0x10c] sm:$0xf] }
  0xe8   :  { %v2080_v39 = vld [vmem:[#allocation16 + $0x128] sm:$0xf0] }
  0xec   :  { %v789_v41 = vpop.f32.mrf.mxu2  ;;  %v765_v44 = vpop.f32.mrf.mxu0 }
  0xed   :  { %v802_v42 = vpop.f32.mrf.mxu3  ;;  %v790_v43 = vadd.f32 %v789_v41, %v777_v40  ;;  %v778_v45 = vpop.f32.mrf.mxu1  ;;  %v2071_v40 = vor.u32 %v2314_v32, %v2070_v31  ;;  %v2075_v41 = vor.u32 %v2310_v33, %v2072_v35  ;;  %v2306_v44 = vld [vmem:[#allocation16 + $0xdc] sm:$0xf0]  ;;  %v2336_v31 = vld [vmem:[#allocation16 + $0x1d4] sm:$0xf]  ;;  %v2190_v33 = vld [vmem:[#allocation16 + $0x1d8] sm:$0xf]  ;;  %v1947_v35 = vor.u32 %v2278_v19, %v1944_v20 }
  0xee   :  { %v2302_v45 = vld [vmem:[#allocation16 + $0xc4] sm:$0xf]  ;;  %v2184_v32 = vld [vmem:[#allocation16 + $0x1f0] sm:$0xf0]  ;;  %v2308_v19 = vld [vmem:[#allocation16 + $0xec] sm:$0xf0] }
  0xef   :  { %v803_v46 = vadd.f32 %v802_v42, %v790_v43  ;;  %v2079_v42 = vor.u32 %v2315_v37, %v2078_v36  ;;  %v2038_v43 = vld [vmem:[#allocation16 + $0xc0] sm:$0xf]  ;;  %1345 = vmatpush.bf16.msra.mxu2 %v2071_v40  ;;  %1358 = vmatpush.bf16.msra.mxu3 %v2075_v41  ;;  %v2341_v36 = vld [vmem:[#allocation16 + $0x1f4] sm:$0xf0]  ;;  %v2337_v37 = vld [vmem:[#allocation16 + $0x1dc] sm:$0xf]  ;;  %v1955_v40 = vor.u32 %v2279_v25, %v1952_v27 }
  0xf0   :  { %v2039_v52 = vor.u32 %v2306_v44, %v2038_v43  ;;  %v2187_v43 = vor.u32 %v2336_v31, %v2184_v32  ;;  %v2150_v44 = vld [vmem:[#allocation16 + $0x190] sm:$0xf]  ;;  %v2304_v20 = vld [vmem:[#allocation16 + $0xd4] sm:$0xf]  ;;  %v2305_v27 = vld [vmem:[#allocation16 + $0xdc] sm:$0xf] }
  0xf1   :  { %v806_v47 = vmax.f32 %v803_v46, 0.0  ;;  %v2083_v46 = vor.u32 %v2311_v38, %v2080_v39  ;;  %1371 = vmatpush.bf16.msrb.mxu1 %v2079_v42  ;;  %v2192_v38 = vld [vmem:[#allocation16 + $0x1f8] sm:$0xf0]  ;;  %v1951_v39 = vor.u32 %v2283_v24, %v1950_v23  ;;  %v2183_v42 = vor.u32 %v2340_v29, %v2182_v28  ;;  %v2062_v23 = vld [vmem:[#allocation16 + $0xd8] sm:$0xf] }
  0xf2   :  { %v2309_v24 = vld [vmem:[#allocation16 + $0xf4] sm:$0xf0]  ;;  %v2064_v28 = vld [vmem:[#allocation16 + $0xf8] sm:$0xf0]  ;;  %v2022_v29 = vld [vmem:[#allocation16 + $0x90] sm:$0xf] }
  0xf3   :  { %v807_v48 = vpack.c.bf16 %v806_v47, %v806_v47  ;;  %v2040_v47 = vld [vmem:[#allocation16 + $0xe0] sm:$0xf0]  ;;  %1384 = vmatpush.bf16.msrb.mxu0 %v2083_v46  ;;  %1346 = vmatpush.bf16.msra.mxu2 %v2039_v52  ;;  %v2191_v46 = vor.u32 %v2341_v36, %v2190_v33  ;;  %v2160_v52 = vld [vmem:[#allocation16 + $0x1b8] sm:$0xf0]  ;;  %v2300_v31 = vld [vmem:[#allocation16 + $0xac] sm:$0xf0] }
  0xf4   :  { %v791_v49 = vpop.f32.mrf.mxu2  ;;  %v2296_v32 = vld [vmem:[#allocation16 + $0x94] sm:$0xf]  ;;  %v2030_v36 = vld [vmem:[#allocation16 + $0x98] sm:$0xf] }
  0xf5   :  { %v804_v50 = vpop.f32.mrf.mxu3  ;;  %884 = vmatmul.bf16.vlgmr.msra.gmra.mxu0 %v807_v48  ;;  %v2046_v48 = vld [vmem:[#allocation16 + $0xc8] sm:$0xf]  ;;  %v2024_v33 = vld [vmem:[#allocation16 + $0xb0] sm:$0xf0] }
  0xf6   :  { %v2307_v49 = vld [vmem:[#allocation16 + $0xe4] sm:$0xf0]  ;;  %v2303_v50 = vld [vmem:[#allocation16 + $0xcc] sm:$0xf] }
 0x172   :  { %v885_v54 = vpop.f32.mrf.mxu0 }
 0x173   :  { %v2776_v55 = vadd.f32 %v2359_v53, %v885_v54  ;;  %v2043_v53 = vor.u32 %v2302_v45, %v2040_v47  ;;  %v2047_v54 = vor.u32 %v2307_v49, %v2046_v48  ;;  %v2332_v45 = vld [vmem:[#allocation16 + $0x1ac] sm:$0xf0]  ;;  %v2195_v47 = vor.u32 %v2337_v37, %v2192_v38  ;;  %v2328_v48 = vld [vmem:[#allocation16 + $0x194] sm:$0xf]  ;;  %v2158_v49 = vld [vmem:[#allocation16 + $0x198] sm:$0xf] }
 0x174   :  { %v2301_v37 = vld [vmem:[#allocation16 + $0xb4] sm:$0xf0]  ;;  %v2297_v38 = vld [vmem:[#allocation16 + $0x9c] sm:$0xf] }
 0x175   :  { %v890_v56 = vmul.f32 0.5, %v2776_v55  ;;  %889 = vst [vmem:[#allocation18] sm:$0xff] %v2776_v55  ;;  %1359 = vmatpush.bf16.msra.mxu3 %v2043_v53  ;;  %1372 = vmatpush.bf16.msrb.mxu1 %v2047_v54  ;;  %v2151_v53 = vor.u32 %v2332_v45, %v2150_v44  ;;  %v2288_v44 = vld [vmem:[#allocation16 + $0x54] sm:$0xf] }
 0x176   :  { %v1992_v45 = vld [vmem:[#allocation16 + $0x70] sm:$0xf0]  ;;  %1627 = dma.vmem_to_hbm [thread:$0]  %s1623_s5, 128, %s1625_s21, [#allocation19]  }
 0x177   :  { %v891_v57 = vmul.f32 1.442695, %v890_v56  ;;  %v2006_v56 = vld [vmem:[#allocation16 + $0x80] sm:$0xf] }
 0x179   :  { %2361 = vpow2.f32 %v891_v57  ;;  %v2298_v57 = vld [vmem:[#allocation16 + $0x9c] sm:$0xf0]  ;;  %1373 = vmatpush.bf16.msrb.mxu1 %v2015_v3  ;;  %v2321_v3 = vld [vmem:[#allocation16 + $0x15c] sm:$0xf] }
 0x17a   :  { %v887_v58 = vpop.f32.mrf.mxu0  ;;  %v2007_v1 = vor.u32 %v2298_v57, %v2006_v56  ;;  %v2131_v5 = vor.u32 %v2321_v3, %v2128_v4 }
 0x17b   :  { %v2294_v58 = vld [vmem:[#allocation16 + $0x84] sm:$0xf] }
 0x17c   :  { %v2011_v2 = vor.u32 %v2294_v58, %v2008_v60  ;;  %1347 = vmatpush.bf16.msra.mxu2 %v2007_v1  ;;  %v2118_v58 = vld [vmem:[#allocation16 + $0x150] sm:$0xf]  ;;  %v2320_v60 = vld [vmem:[#allocation16 + $0x154] sm:$0xf] }
 0x17d   :  { %1374 = vmatpush.bf16.msrb.mxu1 %v1983_v17  ;;  %v2123_v1 = vor.u32 %v2320_v60, %v2120_v62  ;;  %v2281_v60 = vld [vmem:[#allocation16 + $0x1c] sm:$0xf] }
 0x17e   :  { %1360 = vmatpush.bf16.msra.mxu3 %v2011_v2  ;;  %v2127_v2 = vor.u32 %v2325_v0, %v2126_v63 }
 0x17f   :  { %v2362_v59 = vpop.eup %2361 }
 0x180   :  { %895 = vrot.lane.b32.xlu0 %v2362_v59, %s2686_s6  ;;  %v2051_v59 = vor.u32 %v2303_v50, %v2048_v51  ;;  %1348 = vmatpush.bf16.msra.mxu2 %v1975_v14  ;;  %v2333_v50 = vld [vmem:[#allocation16 + $0x1b4] sm:$0xf0]  ;;  %v2329_v51 = vld [vmem:[#allocation16 + $0x19c] sm:$0xf]  ;;  %v2095_v14 = vor.u32 %v2317_v12, %v2094_v11 }
 0x181   :  { %1375 = vmatpush.bf16.msrb.mxu1 %v1951_v39  ;;  %v2159_v56 = vor.u32 %v2333_v50, %v2158_v49  ;;  %v2163_v57 = vor.u32 %v2329_v51, %v2160_v52  ;;  %v2031_v39 = vor.u32 %v2301_v37, %v2030_v36  ;;  %v2000_v49 = vld [vmem:[#allocation16 + $0x78] sm:$0xf0]  ;;  %v1995_v50 = vor.u32 %v2288_v44, %v1992_v45  ;;  %v1958_v52 = vld [vmem:[#allocation16 + $0x10] sm:$0xf] }
 0x182   :  { %1385 = vmatpush.bf16.msrb.mxu0 %v2051_v59  ;;  %1361 = vmatpush.bf16.msra.mxu3 %v1979_v16  ;;  %v2324_v59 = vld [vmem:[#allocation16 + $0x16c] sm:$0xf0]  ;;  %v2096_v16 = vld [vmem:[#allocation16 + $0x138] sm:$0xf0] }
 0x183   :  { %v2119_v61 = vor.u32 %v2324_v59, %v2118_v58  ;;  %v2099_v17 = vor.u32 %v2313_v15, %v2096_v16  ;;  %v1966_v58 = vld [vmem:[#allocation16 + $0x18] sm:$0xf] }
 0x184   :  { %1349 = vmatpush.bf16.msra.mxu2 %v1943_v30  ;;  %v2067_v30 = vor.u32 %v2305_v27, %v2064_v28  ;;  %v2285_v59 = vld [vmem:[#allocation16 + $0x34] sm:$0xf0] }
 0x185   :  { %v1967_v0 = vor.u32 %v2285_v59, %v1966_v58 }
 0x186   :  { %1386 = vmatpush.bf16.msrb.mxu0 %v2019_v7  ;;  %1362 = vmatpush.bf16.msra.mxu3 %v1947_v35  ;;  %v2316_v7 = vld [vmem:[#allocation16 + $0x12c] sm:$0xf0]  ;;  %v2027_v35 = vor.u32 %v2296_v32, %v2024_v33 }
 0x187   :  { %v2087_v9 = vor.u32 %v2316_v7, %v2086_v6 }
 0x188   :  { %1394 = vmatpush.bf16.msrb.mxu2 %v2183_v42  ;;  %v2292_v42 = vld [vmem:[#allocation16 + $0x6c] sm:$0xf0] }
 0x18a   :  { %1387 = vmatpush.bf16.msrb.mxu0 %v1987_v22  ;;  %1407 = vmatpush.bf16.msrb.mxu3 %v2187_v43  ;;  %v2056_v22 = vld [vmem:[#allocation16 + $0xf0] sm:$0xf0] }
 0x18b   :  { %v2059_v25 = vor.u32 %v2304_v20, %v2056_v22 }
 0x18c   :  { %1395 = vmatpush.bf16.msrb.mxu2 %v2151_v53  ;;  %v2284_v53 = vld [vmem:[#allocation16 + $0x2c] sm:$0xf0] }
 0x18d   :  { %v1959_v62 = vor.u32 %v2284_v53, %v1958_v52 }
 0x18e   :  { %1388 = vmatpush.bf16.msrb.mxu0 %v1955_v40  ;;  %v2032_v40 = vld [vmem:[#allocation16 + $0xb8] sm:$0xf0] }
 0x18f   :  { %v2035_v43 = vor.u32 %v2297_v38, %v2032_v40 }
 0x190   :  { %1396 = vmatpush.bf16.msrb.mxu2 %v2119_v61  ;;  %v1968_v61 = vld [vmem:[#allocation16 + $0x38] sm:$0xf0] }
 0x192   :  { %1433 = vmatpush.bf16.msra.mxu0 %v2195_v47 }
 0x194   :  { %1397 = vmatpush.bf16.msrb.mxu2 %v2087_v9 }
 0x196   :  { %1434 = vmatpush.bf16.msra.mxu0 %v2163_v57  ;;  %v1960_v57 = vld [vmem:[#allocation16 + $0x30] sm:$0xf0] }
 0x19a   :  { %1435 = vmatpush.bf16.msra.mxu0 %v2131_v5 }
 0x19e   :  { %1436 = vmatpush.bf16.msra.mxu0 %v2099_v17 }
 0x1a2   :  { %1437 = vmatpush.bf16.msra.mxu0 %v2067_v30 }
 0x1a6   :  { %1438 = vmatpush.bf16.msra.mxu0 %v2035_v43 }
 0x1f2   :  { %v896_v21 = vpop.permute.xlu0 %895 }
 0x1f3   :  { %v898_v26 = vmul.f32 %v896_v21, %v893_v13  ;;  %v2091_v13 = vor.u32 %v2312_v8, %v2088_v10  ;;  %v2055_v21 = vor.u32 %v2308_v19, %v2054_v18  ;;  %v2787_v8 = vld [vmem:[%s2866_s9] sm:$0xff]  ;;  %s2688_s9 = smov [#allocation17]  }
 0x1f4   :  { %v1008_v9 = vperm.slane %v2787_v8, 2  ;;  %v1009_v10 = vperm.slane %v2787_v8, 3  ;;  %v1006_v15 = vperm.slane %v2787_v8, 0  ;;  %v1007_v16 = vperm.slane %v2787_v8, 1  ;;  %s1611_s11 = sshll.u32 %s2688_s9, 4  ;;  %s1612_s11 = int_to_ptr.vmem [resolvable:$true] %s1611_s11 }
 0x1f5   :  { %v899_v34 = vadd.f32 %v898_v26, %v2776_v55  ;;  %v2152_v55 = vld [vmem:[#allocation16 + $0x1b0] sm:$0xf0]  ;;  %v2063_v26 = vor.u32 %v2309_v24, %v2062_v23  ;;  %1398 = vmatpush.bf16.msrb.mxu2 %v2055_v21  ;;  %v1012_v33 = vperm.slane %v2787_v8, 6  ;;  %v1010_v45 = vperm.slane %v2787_v8, 4 }
 0x1f6   :  { %v2155_v54 = vor.u32 %v2328_v48, %v2152_v55  ;;  %v2293_v48 = vld [vmem:[#allocation16 + $0x74] sm:$0xf0]  ;;  %v2289_v55 = vld [vmem:[#allocation16 + $0x5c] sm:$0xf] }
 0x1f7   :  { %v900_v41 = vpack.c.bf16 %v899_v34, %v899_v34  ;;  %v2023_v34 = vor.u32 %v2300_v31, %v2022_v29 }
 0x1f8   :  { %1408 = vmatpush.bf16.msrb.mxu3 %v2155_v54  ;;  %v2280_v54 = vld [vmem:[#allocation16 + $0x14] sm:$0xf] }
 0x1f9   :  { %1939 = vmatmul.msk.bf16.vlgmr.msra.gmra.mxu1 %vm921_vm0, %v900_v41  ;;  %v1990_v41 = vld [vmem:[#allocation16 + $0x50] sm:$0xf]  ;;  %1399 = vmatpush.bf16.msrb.mxu2 %v2023_v34  ;;  %v1963_v63 = vor.u32 %v2280_v54, %v1960_v57  ;;  %v1013_v34 = vperm.slane %v2787_v8, 7 }
 0x1fa   :  { %1420 = vmatpush.bf16.msra.mxu1 %v2191_v46  ;;  %v1998_v46 = vld [vmem:[#allocation16 + $0x58] sm:$0xf]  ;;  %v1991_v47 = vor.u32 %v2292_v42, %v1990_v41 }
 0x1fb   :  { %v1999_v51 = vor.u32 %v2293_v48, %v1998_v46 }
 0x1fc   :  { %1409 = vmatpush.bf16.msrb.mxu3 %v2123_v1  ;;  %v1971_v1 = vor.u32 %v2281_v60, %v1968_v61 }
 0x1fd   :  { %1400 = vmatpush.bf16.msrb.mxu2 %v1991_v47 }
 0x1fe   :  { %1421 = vmatpush.bf16.msra.mxu1 %v2159_v56  ;;  %v2003_v56 = vor.u32 %v2289_v55, %v2000_v49  ;;  %v1011_v55 = vperm.slane %v2787_v8, 5 }
 0x200   :  { %1410 = vmatpush.bf16.msrb.mxu3 %v2091_v13  ;;  %1439 = vmatpush.bf16.msra.mxu0 %v2003_v56 }
 0x201   :  { %1401 = vmatpush.bf16.msrb.mxu2 %v1959_v62 }
 0x202   :  { %1422 = vmatpush.bf16.msra.mxu1 %v2127_v2  ;;  %v2360_v2 = vld [vmem:[#allocation14] ss:$0 sm:$0xff] }
 0x204   :  { %1411 = vmatpush.bf16.msrb.mxu3 %v2059_v25  ;;  %1440 = vmatpush.bf16.msra.mxu0 %v1971_v1 }
 0x206   :  { %1423 = vmatpush.bf16.msra.mxu1 %v2095_v14 }
 0x208   :  { %1412 = vmatpush.bf16.msrb.mxu3 %v2027_v35 }
 0x20a   :  { %1424 = vmatpush.bf16.msra.mxu1 %v2063_v26 }
 0x20c   :  { %1413 = vmatpush.bf16.msrb.mxu3 %v1995_v50 }
 0x20e   :  { %1425 = vmatpush.bf16.msra.mxu1 %v2031_v39 }
 0x210   :  { %1414 = vmatpush.bf16.msrb.mxu3 %v1963_v63 }
 0x212   :  { %1426 = vmatpush.bf16.msra.mxu1 %v1999_v51 }
 0x216   :  { %1427 = vmatpush.bf16.msra.mxu1 %v1967_v0 }
 0x276   :  { %v934_v3 = vpop.f32.mrf.mxu1 }
 0x277   :  { %v935_v4 = vadd.f32 %v2360_v2, %v934_v3 }
 0x279   :  { %v938_v5 = vmax.f32 %v935_v4, 0.0 }
 0x27b   :  { %v939_v6 = vpack.c.bf16 %v938_v5, %v938_v5 }
 0x27d   :  { %1350 = vmatmul.bf16.vlgmr.msra.gmra.mxu2 %v939_v6  ;;  %1363 = vmatmul.bf16.vlgmr.msra.gmra.mxu3 %v939_v6 }
 0x27e   :  { %1376 = vmatmul.bf16.vlgmr.msrb.gmra.mxu1 %v939_v6  ;;  %1389 = vmatmul.bf16.vlgmr.msrb.gmra.mxu0 %v939_v6  ;;  %v936_v7 = vpop.f32.mrf.mxu1 }
 0x28d   :  { %1402 = vmatmul.bf16.vlgmr.msrb.gmra.mxu2 %v939_v6  ;;  %1415 = vmatmul.bf16.vlgmr.msrb.gmra.mxu3 %v939_v6 }
 0x28e   :  { %1428 = vmatmul.bf16.vlgmr.msra.gmra.mxu1 %v939_v6  ;;  %1441 = vmatmul.bf16.vlgmr.msra.gmra.mxu0 %v939_v6 }
 0x2fb   :  { %v1377_v11 = vpop.f32.mrf.mxu1  ;;  %v1390_v12 = vpop.f32.mrf.mxu0 }
 0x2fc   :  { %v1378_v13 = vadd.f32 %v1377_v11, %v1008_v9  ;;  %v1391_v14 = vadd.f32 %v1390_v12, %v1009_v10 }
 0x2fe   :  { %v2198_v17 = vmul.f32 -1.442695, %v1378_v13  ;;  %v2199_v18 = vmul.f32 -1.442695, %v1391_v14 }
 0x300   :  { %2363 = vpow2.f32 %v2198_v17  ;;  %v1351_v19 = vpop.f32.mrf.mxu2  ;;  %v1364_v20 = vpop.f32.mrf.mxu3 }
 0x301   :  { %2365 = vpow2.f32 %v2199_v18  ;;  %v1352_v21 = vadd.f32 %v1351_v19, %v1006_v15  ;;  %v1365_v22 = vadd.f32 %v1364_v20, %v1007_v16 }
 0x303   :  { %v2196_v23 = vmul.f32 -1.442695, %v1352_v21  ;;  %v2197_v24 = vmul.f32 -1.442695, %v1365_v22  ;;  %v1379_v25 = vpop.f32.mrf.mxu1  ;;  %v1392_v26 = vpop.f32.mrf.mxu0 }
 0x305   :  { %2367 = vpow2.f32 %v2196_v23 }
 0x306   :  { %v2364_v27 = vpop.eup %2363  ;;  %2369 = vpow2.f32 %v2197_v24 }
 0x307   :  { %v2366_v28 = vpop.eup %2365  ;;  %v1472_v29 = vadd.f32 1.0, %v2364_v27 }
 0x308   :  { %v2793_v30 = vadd.f32 1.0, %v2366_v28  ;;  %v1353_v31 = vpop.f32.mrf.mxu2  ;;  %v1366_v32 = vpop.f32.mrf.mxu3 }
 0x309   :  { %2371 = vrcp.f32 %v1472_v29  ;;  %v1517_v40 = vand.u32 2147483647, %v1472_v29  ;;  %v1519_v41 = vand.u32 2147483648, %v1472_v29  ;;  %vm1513_vm1 = vweird.f32 %v1472_v29 }
 0x30a   :  { %2373 = vrcp.f32 %v2793_v30  ;;  %v1532_v47 = vand.u32 2147483647, %v2793_v30  ;;  %v1534_v48 = vand.u32 2147483648, %v2793_v30  ;;  %vm1528_vm3 = vweird.f32 %v2793_v30 }
 0x30b   :  { %v2368_v35 = vpop.eup %2367  ;;  %v1429_v36 = vpop.f32.mrf.mxu1  ;;  %vm2808_vm2 = vcmp.eq.f32.partialorder %v1517_v40, 8.507059e+37  ;;  %v1520_v54 = vor.u32 1.1754944e-38, %v1519_v41 }
 0x30c   :  { %v1442_v37 = vpop.f32.mrf.mxu0  ;;  %v2370_v38 = vpop.eup %2369  ;;  %v2798_v39 = vadd.f32 1.0, %v2368_v35  ;;  %v1430_v43 = vadd.f32 %v1429_v36, %v1012_v33  ;;  %vm2814_vm4 = vcmp.eq.f32.partialorder %v1532_v47, 8.507059e+37  ;;  %v1535_v63 = vor.u32 1.1754944e-38, %v1534_v48 }
 0x30d   :  { %v2800_v42 = vadd.f32 1.0, %v2370_v38  ;;  %v1443_v44 = vadd.f32 %v1442_v37, %v1013_v34 }
 0x30e   :  { %2375 = vrcp.f32 %v2798_v39  ;;  %v2202_v58 = vmul.f32 -1.442695, %v1430_v43  ;;  %v1487_v10 = vand.u32 2147483647, %v2798_v39  ;;  %v1489_v11 = vand.u32 2147483648, %v2798_v39 }
 0x30f   :  { %v2372_v46 = vpop.eup %2371  ;;  %2377 = vrcp.f32 %v2800_v42  ;;  %v2203_v59 = vmul.f32 -1.442695, %v1443_v44  ;;  %v1504_v18 = vand.u32 2147483648, %v2800_v42  ;;  %v1502_v27 = vand.u32 2147483647, %v2800_v42 }
 0x310   :  { %v2374_v49 = vpop.eup %2373  ;;  %v1509_v50 = vmul.f32 %v2372_v46, %v1472_v29  ;;  %v1403_v51 = vpop.f32.mrf.mxu2  ;;  %vm1514_vm5 = vweird.f32 %v2372_v46  ;;  %2379 = vpow2.f32 %v2202_v58  ;;  %vm1483_vm11 = vweird.f32 %v2798_v39 }
 0x311   :  { %v1416_v52 = vpop.f32.mrf.mxu3  ;;  %v1524_v56 = vmul.f32 %v2374_v49, %v2793_v30  ;;  %v1404_v60 = vadd.f32 %v1403_v51, %v1010_v45  ;;  %vm1529_vm6 = vweird.f32 %v2374_v49  ;;  %2381 = vpow2.f32 %v2203_v59  ;;  %vm1515_vm7 = vmor %vm1513_vm1, %vm1514_vm5 }
 0x312   :  { %v1510_v57 = vsub.f32 1.0, %v1509_v50  ;;  %v1417_v0 = vadd.f32 %v1416_v52, %v1011_v55  ;;  %vm1530_vm8 = vmor %vm1528_vm3, %vm1529_vm6  ;;  %v1490_v31 = vor.u32 1.1754944e-38, %v1489_v11  ;;  %vm1498_vm13 = vweird.f32 %v2800_v42 }
 0x313   :  { %v1525_v61 = vsub.f32 1.0, %v1524_v56  ;;  %v1431_v1 = vpop.f32.mrf.mxu1  ;;  %v2200_v5 = vmul.f32 -1.442695, %v1404_v60  ;;  %vm1488_vm14 = vcmp.eq.f32.partialorder %v1487_v10, 8.507059e+37  ;;  %v1505_v36 = vor.u32 1.1754944e-38, %v1504_v18 }
 0x314   :  { %v1444_v2 = vpop.f32.mrf.mxu0  ;;  %v2376_v3 = vpop.eup %2375  ;;  %v1511_v4 = vmul.f32 %v2372_v46, %v1510_v57  ;;  %v2201_v15 = vmul.f32 -1.442695, %v1417_v0  ;;  %vm1503_vm0 = vcmp.eq.f32.partialorder %v1502_v27, 8.507059e+37 }
 0x315   :  { %v2378_v6 = vpop.eup %2377  ;;  %v1526_v7 = vmul.f32 %v2374_v49, %v1525_v61  ;;  %v1479_v8 = vmul.f32 %v2376_v3, %v2798_v39  ;;  %2383 = vpow2.f32 %v2200_v5  ;;  %vm1484_vm9 = vweird.f32 %v2376_v3 }
 0x316   :  { %v1512_v9 = vadd.f32 %v2372_v46, %v1511_v4  ;;  %v1494_v12 = vmul.f32 %v2378_v6, %v2800_v42  ;;  %2385 = vpow2.f32 %v2201_v15  ;;  %v2380_v24 = vpop.eup %2379  ;;  %vm1499_vm10 = vweird.f32 %v2378_v6  ;;  %vm1485_vm12 = vmor %vm1483_vm11, %vm1484_vm9 }
 0x317   :  { %v1527_v13 = vadd.f32 %v2374_v49, %v1526_v7  ;;  %v1480_v14 = vsub.f32 1.0, %v1479_v8  ;;  %v2382_v28 = vpop.eup %2381  ;;  %v1476_v30 = vadd.f32 1.0, %v2380_v24  ;;  %vm1500_vm15 = vmor %vm1498_vm13, %vm1499_vm10 }
 0x318   :  { %v1516_v16 = vsel %vm1515_vm7, %v2372_v46, %v1512_v9  ;;  %v1495_v17 = vsub.f32 1.0, %v1494_v12  ;;  %v1405_v19 = vpop.f32.mrf.mxu2  ;;  %v1477_v33 = vadd.f32 1.0, %v2382_v28 }
 0x319   :  { %v1418_v20 = vpop.f32.mrf.mxu3  ;;  %v1521_v21 = vsel %vm2808_vm2, %v1520_v54, %v1516_v16  ;;  %v1531_v22 = vsel %vm1530_vm8, %v2374_v49, %v1527_v13  ;;  %v1481_v23 = vmul.f32 %v2376_v3, %v1480_v14  ;;  %2387 = vrcp.f32 %v1476_v30 }
 0x31a   :  { %1600 = vst [vmem:[#allocation17 + $0x10] sm:$0xff] %v1521_v21  ;;  %v1536_v25 = vsel %vm2814_vm4, %v1535_v63, %v1531_v22  ;;  %v1496_v26 = vmul.f32 %v2378_v6, %v1495_v17  ;;  %2389 = vrcp.f32 %v1477_v33  ;;  %v1577_v46 = vand.u32 2147483647, %v1476_v30 }
 0x31b   :  { %1601 = vst [vmem:[#allocation17 + $0x18] sm:$0xff] %v1536_v25  ;;  %v1482_v29 = vadd.f32 %v2376_v3, %v1481_v23  ;;  %v2384_v34 = vpop.eup %2383  ;;  %v1579_v55 = vand.u32 2147483648, %v1476_v30  ;;  %v1592_v49 = vand.u32 2147483647, %v1477_v33  ;;  %v1594_v51 = vand.u32 2147483648, %v1477_v33 }
 0x31c   :  { %v1497_v32 = vadd.f32 %v2378_v6, %v1496_v26  ;;  %v2386_v39 = vpop.eup %2385  ;;  %v1474_v41 = vadd.f32 1.0, %v2384_v34  ;;  %vm1573_vm1 = vweird.f32 %v1476_v30  ;;  %vm2838_vm3 = vcmp.eq.f32.partialorder %v1577_v46, 8.507059e+37 }
 0x31d   :  { %v1486_v35 = vsel %vm1485_vm12, %v2376_v3, %v1482_v29  ;;  %v2835_v43 = vadd.f32 1.0, %v2386_v39  ;;  %vm1588_vm4 = vweird.f32 %v1477_v33  ;;  %v1580_v60 = vor.u32 1.1754944e-38, %v1579_v55 }
 0x31e   :  { %v1491_v37 = vsel %vm1488_vm14, %v1490_v31, %v1486_v35  ;;  %v1501_v38 = vsel %vm1500_vm15, %v2378_v6, %v1497_v32  ;;  %2391 = vrcp.f32 %v1474_v41  ;;  %vm2842_vm6 = vcmp.eq.f32.partialorder %v1592_v49, 8.507059e+37 }
 0x31f   :  { %1598 = vst [vmem:[#allocation17] sm:$0xff] %v1491_v37  ;;  %v1506_v40 = vsel %vm1503_vm0, %v1505_v36, %v1501_v38  ;;  %v2388_v42 = vpop.eup %2387  ;;  %2393 = vrcp.f32 %v2835_v43  ;;  %v1595_v0 = vor.u32 1.1754944e-38, %v1594_v51  ;;  %v1547_v2 = vand.u32 2147483647, %v1474_v41 }
 0x320   :  { %1599 = vst [vmem:[#allocation17 + $0x8] sm:$0xff] %v1506_v40  ;;  %v2390_v44 = vpop.eup %2389  ;;  %v1569_v45 = vmul.f32 %v2388_v42, %v1476_v30  ;;  %vm1574_vm2 = vweird.f32 %v2388_v42  ;;  %v1549_v4 = vand.u32 2147483648, %v1474_v41  ;;  %v1564_v6 = vand.u32 2147483648, %v2835_v43 }
 0x321   :  { %v1584_v47 = vmul.f32 %v2390_v44, %v1477_v33  ;;  %vm1589_vm5 = vweird.f32 %v2390_v44  ;;  %vm1575_vm7 = vmor %vm1573_vm1, %vm1574_vm2  ;;  %v1562_v12 = vand.u32 2147483647, %v2835_v43  ;;  %vm1543_vm11 = vweird.f32 %v1474_v41 }
 0x322   :  { %v1570_v48 = vsub.f32 1.0, %v1569_v45  ;;  %vm1590_vm8 = vmor %vm1588_vm4, %vm1589_vm5  ;;  %v1550_v14 = vor.u32 1.1754944e-38, %v1549_v4  ;;  %vm1558_vm13 = vweird.f32 %v2835_v43  ;;  %vm1548_vm14 = vcmp.eq.f32.partialorder %v1547_v2, 8.507059e+37 }
 0x323   :  { %v1585_v50 = vsub.f32 1.0, %v1584_v47  ;;  %v1565_v17 = vor.u32 1.1754944e-38, %v1564_v6  ;;  %vm1563_vm0 = vcmp.eq.f32.partialorder %v1562_v12, 8.507059e+37 }
 0x324   :  { %v2392_v52 = vpop.eup %2391  ;;  %v1571_v53 = vmul.f32 %v2388_v42, %v1570_v48 }
 0x325   :  { %v2394_v56 = vpop.eup %2393  ;;  %v1586_v57 = vmul.f32 %v2390_v44, %v1585_v50  ;;  %v1539_v58 = vmul.f32 %v2392_v52, %v1474_v41  ;;  %vm1544_vm9 = vweird.f32 %v2392_v52 }
 0x326   :  { %v1572_v59 = vadd.f32 %v2388_v42, %v1571_v53  ;;  %v1554_v62 = vmul.f32 %v2394_v56, %v2835_v43  ;;  %vm1559_vm10 = vweird.f32 %v2394_v56  ;;  %vm1545_vm12 = vmor %vm1543_vm11, %vm1544_vm9 }
 0x327   :  { %v1587_v63 = vadd.f32 %v2390_v44, %v1586_v57  ;;  %v1540_v1 = vsub.f32 1.0, %v1539_v58  ;;  %vm1560_vm15 = vmor %vm1558_vm13, %vm1559_vm10 }
 0x328   :  { %v1576_v3 = vsel %vm1575_vm7, %v2388_v42, %v1572_v59  ;;  %v1555_v5 = vsub.f32 1.0, %v1554_v62 }
 0x329   :  { %v1581_v7 = vsel %vm2838_vm3, %v1580_v60, %v1576_v3  ;;  %v1591_v8 = vsel %vm1590_vm8, %v2390_v44, %v1587_v63  ;;  %v1541_v9 = vmul.f32 %v2392_v52, %v1540_v1 }
 0x32a   :  { %1604 = vst [vmem:[#allocation17 + $0x30] sm:$0xff] %v1581_v7  ;;  %v1596_v10 = vsel %vm2842_vm6, %v1595_v0, %v1591_v8  ;;  %v1556_v11 = vmul.f32 %v2394_v56, %v1555_v5 }
 0x32b   :  { %1605 = vst [vmem:[#allocation17 + $0x38] sm:$0xff] %v1596_v10  ;;  %v1542_v13 = vadd.f32 %v2392_v52, %v1541_v9 }
 0x32c   :  { %v1557_v15 = vadd.f32 %v2394_v56, %v1556_v11 }
 0x32d   :  { %v1546_v16 = vsel %vm1545_vm12, %v2392_v52, %v1542_v13 }
 0x32e   :  { %v1551_v18 = vsel %vm1548_vm14, %v1550_v14, %v1546_v16  ;;  %v1561_v19 = vsel %vm1560_vm15, %v2394_v56, %v1557_v15 }
 0x32f   :  { %1602 = vst [vmem:[#allocation17 + $0x20] sm:$0xff] %v1551_v18  ;;  %v1566_v20 = vsel %vm1563_vm0, %v1565_v17, %v1561_v19 }
 0x330   :  { %1603 = vst [vmem:[#allocation17 + $0x28] sm:$0xff] %v1566_v20 }
 0x331   :  { %1616 = dma.vmem_to_hbm [thread:$0]  %s1612_s11, 1024, %s1614_s25, [#allocation4]  }
 0x332   :  { %2669 = dma.done.wait [#allocation4], 1024  }
 0x333   :  { %2670 = vsyncadd [#allocation4], 4294966272 }
 0x334   :  { %2671 = dma.done.wait [#allocation19], 128  }
 0x335   :  { %2672 = vsyncadd [#allocation19], 4294967168 }
 0x336   :  { %1636 = vsyncpa [#allocation3], 1 }
 0x337   :  { %1637 = vsyncpa [#allocation6], 1 }
 0x338   :  { %1638 = vsyncpa [#allocation9], 1 }
 0x339   :  { %1639 = vsyncpa [#allocation12], 1 }
 0x33a   :  { %1640 = vsyncpa [#allocation15], 1 }
 0x33b   :  { %1641 = vsyncpa [#allocation4], 1 }
 0x33c   :  { %1642 = vsyncpa [#allocation19], 1 }

</bundles_post_ra>
